<compile_context>
chip_gen: v7x
topology: tpu7x:2x2x1
jax: 0.10.0
libtpu: 0.0.40
codegen_flags: <defaults>
</compile_context>

<pallas_src>
import jax
import jax.numpy as jnp
from jax.experimental import pallas as pl
from jax.experimental.pallas import tpu as pltpu


def _round_up(x, m):
    return (x + m - 1) // m * m


def _mlp_kernel(x_ref, *refs):
    """Fused MLP forward in a batch-last layout.

    x_ref:   (input_dim, tile_b) compute-dtype (bf16 or f32) activations
    refs:    (w0, b0, w1, b1, ..., wN, bN, out_ref)
             w_i: (out_i, in_i) compute dtype (torch nn.Linear .weight layout)
             b_i: (out_i, 1)    f32
    out_ref: (3, tile_b) f32 -- lane-dense output block
    """
    out_ref = refs[-1]
    params = refs[:-1]
    n_layers = len(params) // 2
    compute_dtype = x_ref.dtype

    h = x_ref[...]                                        # (in_dim, tile_b)
    for i in range(n_layers):
        w = params[2 * i][...]                            # (out_i, in_i)
        b = params[2 * i + 1][...]                        # (out_i, 1) f32
        # MXU matmul in compute dtype, f32 accumulation; bias + activation in f32.
        acc = jnp.dot(w, h, preferred_element_type=jnp.float32) + b
        if i < n_layers - 1:
            h = jnp.maximum(acc, 0.0).astype(compute_dtype)          # ReLU (hidden)
        else:
            out_ref[...] = jax.nn.sigmoid(acc).astype(out_ref.dtype)  # Sigmoid head


def mlp_forward(x, weights, biases, *, tile_b=1024, compute_dtype=jnp.bfloat16):
    """Run the fused MLP Pallas kernel.

    x:       (B, input_dim) f32 (torch layout, row-major batch-first)
    weights: list of (out_i, in_i) f32  -- torch nn.Linear .weight layout
    biases:  list of (out_i,)      f32  -- torch nn.Linear .bias
    returns  (B, 3) f32
    """
    B, in_dim = x.shape
    out_dim = weights[-1].shape[0]

    # Lane-dense batch tile: a multiple of 128, large enough to amortize per-step
    # overhead, but never larger than the (padded) batch.  Keeping tile_b well below
    # huge values also keeps the double-buffered x tile tiny vs VMEM (incl. v7x 64 MiB).
    tile_b = max(128, min(_round_up(tile_b, 128), _round_up(B, 128)))
    b_pad = _round_up(B, tile_b)

    # Batch-last layout + zero padding to a whole number of tiles.  Casting the input
    # stream to bf16 halves HBM read traffic (the dominant cost for this kernel).
    xt = jnp.transpose(x)                                 # (in_dim, B)
    if b_pad != B:
        xt = jnp.pad(xt, ((0, 0), (0, b_pad - B)))
    xt = xt.astype(compute_dtype)

    grid = (b_pad // tile_b,)

    in_specs = [pl.BlockSpec((in_dim, tile_b), lambda i: (0, i))]
    flat_params = []
    for w, b in zip(weights, biases):
        w_c = jnp.asarray(w, compute_dtype)               # (out_i, in_i)
        b_c = jnp.asarray(b, jnp.float32).reshape(-1, 1)  # (out_i, 1)
        # Constant index_map: params stay resident in VMEM, no re-DMA per grid step.
        in_specs.append(pl.BlockSpec(w_c.shape, lambda i: (0, 0)))
        in_specs.append(pl.BlockSpec(b_c.shape, lambda i: (0, 0)))
        flat_params.extend([w_c, b_c])

    out_spec = pl.BlockSpec((out_dim, tile_b), lambda i: (0, i))

    out_t = pl.pallas_call(
        _mlp_kernel,
        out_shape=jax.ShapeDtypeStruct((out_dim, b_pad), jnp.float32),
        grid_spec=pltpu.PrefetchScalarGridSpec(
            num_scalar_prefetch=0,
            grid=grid,
            in_specs=in_specs,
            out_specs=out_spec,
        ),
        compiler_params=pltpu.CompilerParams(
            dimension_semantics=("parallel",)),  # batch tiles shard across TCs (v7x)
    )(xt, *flat_params)

    return jnp.transpose(out_t[:, :B])                    # (B, out_dim)


def init_mlp_params(key, input_dim, num_layers, num_channels, out_dim=3):
    """Deterministic init matching torch.nn.Linear defaults and layer shapes.

    Layer stack: Linear(input_dim, C), [Linear(C, C)] * (num_layers-2), Linear(C, 3).
    Weights are stored in torch layout (out, in); biases as (out,).
    """
    dims = [input_dim] + [num_channels] * (num_layers - 1) + [out_dim]
    weights, biases = [], []
    for i in range(len(dims) - 1):
        fan_in, fan_out = dims[i], dims[i + 1]
        key, kw, kb = jax.random.split(key, 3)
        bound = 1.0 / jnp.sqrt(jnp.float32(fan_in))
        w = jax.random.uniform(kw, (fan_out, fan_in), jnp.float32, -bound, bound)
        b = jax.random.uniform(kb, (fan_out,), jnp.float32, -bound, bound)
        weights.append(w)
        biases.append(b)
    return weights, biases


def mlp_reference(x, weights, biases):
    h = x
    n = len(weights)
    for i, (w, b) in enumerate(zip(weights, biases)):
        h = h @ w.T + b[None, :]
        h = jnp.maximum(h, 0.0) if i < n - 1 else jax.nn.sigmoid(h)
    return h


if __name__ == "__main__":
    # Small shapes consistent with the module's forward: x is (batch, input_dim).
    input_dim, num_layers, num_channels = 4, 3, 32
    batch = 300  # deliberately not a multiple of the tile to exercise pad/slice path

    key = jax.random.PRNGKey(0)
    key, kx = jax.random.split(key)
    x = jax.random.normal(kx, (batch, input_dim), jnp.float32)
    weights, biases = init_mlp_params(key, input_dim, num_layers, num_channels)

    ref = mlp_reference(x, weights, biases)

    # Exact-path check (f32 operands).
    out_f32 = jax.block_until_ready(
        mlp_forward(x, weights, biases, compute_dtype=jnp.float32))
    assert out_f32.shape == (batch, 3)
    assert jnp.allclose(out_f32, ref, atol=1e-4, rtol=1e-4), "f32 mismatch vs reference"

    # Default fast path: bf16 operands, f32 accumulation (halves HBM read traffic).
    out_bf16 = jax.block_until_ready(mlp_forward(x, weights, biases))
    assert out_bf16.shape == (batch, 3)
    assert jnp.allclose(out_bf16, ref, atol=2e-2, rtol=2e-2), "bf16 mismatch vs reference"

    print("KERNEL_OK")
</pallas_src>

<mosaic_0001>
module attributes {stable_mosaic.version = 11 : i64} {
  func.func @_mlp_kernel(%arg0: i32, %arg1: memref<4x384xf32, #tpu.memory_space<vmem>>, %arg2: memref<32x4xf32, #tpu.memory_space<vmem>>, %arg3: memref<32x1xf32, #tpu.memory_space<vmem>>, %arg4: memref<32x32xf32, #tpu.memory_space<vmem>>, %arg5: memref<32x1xf32, #tpu.memory_space<vmem>>, %arg6: memref<3x32xf32, #tpu.memory_space<vmem>>, %arg7: memref<3x1xf32, #tpu.memory_space<vmem>>, %arg8: memref<3x384xf32, #tpu.memory_space<vmem>>) attributes {dimension_semantics = [#tpu.dimension_semantics<parallel>], iteration_bounds = array<i64: 1>, scalar_prefetch = 0 : i64, scratch_operands = 0 : i64, tpu.core_type = #tpu.core_type<tc>, window_params = [{transform_indices = @transform_0, window_bounds = array<i64: 4, 384>}, {pipeline_mode = #tpu.pipeline_mode<synchronous>, transform_indices = @transform_1, window_bounds = array<i64: 32, 4>}, {pipeline_mode = #tpu.pipeline_mode<synchronous>, transform_indices = @transform_2, window_bounds = array<i64: 32, 1>}, {pipeline_mode = #tpu.pipeline_mode<synchronous>, transform_indices = @transform_3, window_bounds = array<i64: 32, 32>}, {pipeline_mode = #tpu.pipeline_mode<synchronous>, transform_indices = @transform_4, window_bounds = array<i64: 32, 1>}, {pipeline_mode = #tpu.pipeline_mode<synchronous>, transform_indices = @transform_5, window_bounds = array<i64: 3, 32>}, {pipeline_mode = #tpu.pipeline_mode<synchronous>, transform_indices = @transform_6, window_bounds = array<i64: 3, 1>}, {transform_indices = @transform_7, window_bounds = array<i64: 3, 384>}]} {
    %c0 = arith.constant 0 : index
    %c0_0 = arith.constant 0 : index
    %0 = vector.load %arg1[%c0, %c0_0] : memref<4x384xf32, #tpu.memory_space<vmem>>, vector<4x384xf32>
    %c0_1 = arith.constant 0 : index
    %c0_2 = arith.constant 0 : index
    %1 = vector.load %arg2[%c0_1, %c0_2] : memref<32x4xf32, #tpu.memory_space<vmem>>, vector<32x4xf32>
    %c0_3 = arith.constant 0 : index
    %c0_4 = arith.constant 0 : index
    %2 = vector.load %arg3[%c0_3, %c0_4] : memref<32x1xf32, #tpu.memory_space<vmem>>, vector<32x1xf32>
    %cst = arith.constant dense<0.000000e+00> : vector<32x384xf32>
    %3 = tpu.matmul %1, %0, %cst {dimension_numbers = #tpu.dot_dimension_numbers<[1], [0], [0], [1], [0, 0, 1, 1], [], []>} : vector<32x4xf32>, vector<4x384xf32>, vector<32x384xf32> -> vector<32x384xf32>
    %4 = vector.broadcast %2 : vector<32x1xf32> to vector<32x384xf32>
    %5 = arith.addf %3, %4 : vector<32x384xf32>
    %cst_5 = arith.constant 0.000000e+00 : f32
    %6 = vector.broadcast %cst_5 : f32 to vector<32x384xf32>
    %7 = arith.maximumf %5, %6 : vector<32x384xf32>
    %c0_6 = arith.constant 0 : index
    %c0_7 = arith.constant 0 : index
    %8 = vector.load %arg4[%c0_6, %c0_7] : memref<32x32xf32, #tpu.memory_space<vmem>>, vector<32x32xf32>
    %c0_8 = arith.constant 0 : index
    %c0_9 = arith.constant 0 : index
    %9 = vector.load %arg5[%c0_8, %c0_9] : memref<32x1xf32, #tpu.memory_space<vmem>>, vector<32x1xf32>
    %cst_10 = arith.constant dense<0.000000e+00> : vector<32x384xf32>
    %10 = tpu.matmul %8, %7, %cst_10 {dimension_numbers = #tpu.dot_dimension_numbers<[1], [0], [0], [1], [0, 0, 1, 1], [], []>} : vector<32x32xf32>, vector<32x384xf32>, vector<32x384xf32> -> vector<32x384xf32>
    %11 = vector.broadcast %9 : vector<32x1xf32> to vector<32x384xf32>
    %12 = arith.addf %10, %11 : vector<32x384xf32>
    %cst_11 = arith.constant 0.000000e+00 : f32
    %13 = vector.broadcast %cst_11 : f32 to vector<32x384xf32>
    %14 = arith.maximumf %12, %13 : vector<32x384xf32>
    %c0_12 = arith.constant 0 : index
    %c0_13 = arith.constant 0 : index
    %15 = vector.load %arg6[%c0_12, %c0_13] : memref<3x32xf32, #tpu.memory_space<vmem>>, vector<3x32xf32>
    %c0_14 = arith.constant 0 : index
    %c0_15 = arith.constant 0 : index
    %16 = vector.load %arg7[%c0_14, %c0_15] : memref<3x1xf32, #tpu.memory_space<vmem>>, vector<3x1xf32>
    %cst_16 = arith.constant dense<0.000000e+00> : vector<3x384xf32>
    %17 = tpu.matmul %15, %14, %cst_16 {dimension_numbers = #tpu.dot_dimension_numbers<[1], [0], [0], [1], [0, 0, 1, 1], [], []>} : vector<3x32xf32>, vector<32x384xf32>, vector<3x384xf32> -> vector<3x384xf32>
    %18 = vector.broadcast %16 : vector<3x1xf32> to vector<3x384xf32>
    %19 = arith.addf %17, %18 : vector<3x384xf32>
    %20 = arith.negf %19 : vector<3x384xf32>
    %21 = math.exp %20 : vector<3x384xf32>
    %cst_17 = arith.constant 1.000000e+00 : f32
    %22 = vector.broadcast %cst_17 : f32 to vector<3x384xf32>
    %23 = arith.addf %22, %21 : vector<3x384xf32>
    %24 = arith.divf %22, %23 : vector<3x384xf32>
    %c0_18 = arith.constant 0 : index
    %c0_19 = arith.constant 0 : index
    %25 = vector.load %arg8[%c0_18, %c0_19] : memref<3x384xf32, #tpu.memory_space<vmem>>, vector<3x384xf32>
    tpu.vector_store %arg8[%c0_18, %c0_19], %24 {strides = array<i32>} : memref<3x384xf32, #tpu.memory_space<vmem>>, vector<3x384xf32>,
    return
  }
  func.func @transform_0(%arg0: i32) -> (i32, i32) {
    %c0_i32 = arith.constant 0 : i32
    %c0_i32_0 = arith.constant 0 : i32
    return %c0_i32, %arg0 : i32, i32
  }
  func.func @transform_1(%arg0: i32) -> (i32, i32) {
    %c0_i32 = arith.constant 0 : i32
    %c0_i32_0 = arith.constant 0 : i32
    %c0_i32_1 = arith.constant 0 : i32
    return %c0_i32, %c0_i32_0 : i32, i32
  }
  func.func @transform_2(%arg0: i32) -> (i32, i32) {
    %c0_i32 = arith.constant 0 : i32
    %c0_i32_0 = arith.constant 0 : i32
    %c0_i32_1 = arith.constant 0 : i32
    return %c0_i32, %c0_i32_0 : i32, i32
  }
  func.func @transform_3(%arg0: i32) -> (i32, i32) {
    %c0_i32 = arith.constant 0 : i32
    %c0_i32_0 = arith.constant 0 : i32
    %c0_i32_1 = arith.constant 0 : i32
    return %c0_i32, %c0_i32_0 : i32, i32
  }
  func.func @transform_4(%arg0: i32) -> (i32, i32) {
    %c0_i32 = arith.constant 0 : i32
    %c0_i32_0 = arith.constant 0 : i32
    %c0_i32_1 = arith.constant 0 : i32
    return %c0_i32, %c0_i32_0 : i32, i32
  }
  func.func @transform_5(%arg0: i32) -> (i32, i32) {
    %c0_i32 = arith.constant 0 : i32
    %c0_i32_0 = arith.constant 0 : i32
    %c0_i32_1 = arith.constant 0 : i32
    return %c0_i32, %c0_i32_0 : i32, i32
  }
  func.func @transform_6(%arg0: i32) -> (i32, i32) {
    %c0_i32 = arith.constant 0 : i32
    %c0_i32_0 = arith.constant 0 : i32
    %c0_i32_1 = arith.constant 0 : i32
    return %c0_i32, %c0_i32_0 : i32, i32
  }
  func.func @transform_7(%arg0: i32) -> (i32, i32) {
    %c0_i32 = arith.constant 0 : i32
    %c0_i32_0 = arith.constant 0 : i32
    return %c0_i32, %arg0 : i32, i32
  }
}

</mosaic_0001>

<bundles_post_ra>
// kernel: tpu_custom_call.1
= control target key start
LH: loop header
LB: loop body
LE: loop exit
PB: predicated region body
PF: predicated region fallthrough
CT: control target
= control target key end

     0   :  { %vm73_vm0 = vcmask 1043456   ;;  %vm60_vm1 = vcmask 31744   ;;  %v831_v6 = vmov 0.0   ;;  %v832_v9 = vmov 0   ;;  %s980_s0 = inlined_call_operand.vmem [shape: f32[4,384], index: 0, kind: input, shape index: {}]   ;;  %s981_s1 = inlined_call_operand.vmem [shape: f32[32,4], index: 1, kind: input, shape index: {}]   ;;  %s982_s2 = inlined_call_operand.vmem [shape: f32[32,1], index: 2, kind: input, shape index: {}]   ;;  %s983_s3 = inlined_call_operand.vmem [shape: f32[32,32], index: 3, kind: input, shape index: {}]   ;;  %s984_s4 = inlined_call_operand.vmem [shape: f32[32,1], index: 4, kind: input, shape index: {}]   ;;  %s985_s5 = inlined_call_operand.vmem [shape: f32[3,32], index: 5, kind: input, shape index: {}]   ;;  %s986_s6 = inlined_call_operand.vmem [shape: f32[3,1], index: 6, kind: input, shape index: {}]   ;;  %s987_s7 = inlined_call_operand.hbm [shape: f32[3,384], index: 7, kind: output, shape index: {}]  }
   0x1   :  { %v28_v0 = vld [vmem:[%s980_s0 + $0x8] sm:$0xf]  ;;  %v29_v1 = vld [vmem:[%s981_s1] sm:$0xff]  ;;  %v31_v5 = vld [vmem:[%s981_s1 + $0x10] sm:$0xff]  ;;  %144 = vmatprep.mubr.f32.mxu0 %v831_v6  ;;  %792 = vset.pattern.permute.xlu0 %v832_v9 }
   0x2   :  { %v27_v2 = vld [vmem:[%s980_s0] sm:$0xff]  ;;  %724 = vmatprep.subr.msk.mxu1 %vm73_vm0, %v28_v0  ;;  %726 = vmatprep.mubr.msk.f32.mxu1 %vm60_vm1, %v29_v1  ;;  %v30_v4 = vld [vmem:[%s981_s1 + $0x8] sm:$0xff]  ;;  %v32_v8 = vld [vmem:[%s981_s1 + $0x18] sm:$0xff] }
   0x3   :  { %v59_v3 = vcombine.high %v27_v2, %v27_v2  ;;  %725 = vmatpush3.msk.msra.mxu1 %vm73_vm0, %v28_v0  ;;  %v33_v7 = vld [vmem:[%s982_s2] sm:$0xff]  ;;  %v35_v10 = vld [vmem:[%s982_s2 + $0x10] sm:$0xff] }
   0x4   :  { %727 = vmatmul.mubr.msk.f32.vlgmr.msra.gmra.mrb[0].mxu1 %vm60_vm1, %v30_v4 }
   0x5   :  { %682 = vmatprep.subr.msk.mxu0 %vm73_vm0, %v59_v3  ;;  %729 = vmatprep.mubr.msk.f32.mxu1 %vm60_vm1, %v31_v5 }
   0x6   :  { %683 = vmatpush1.msk.msra.mxu0 %vm73_vm0, %v27_v2 }
   0x7   :  { %684 = vmatmul.mubr.msk.f32.vlgmr.msra.gmra.mrb[0].mxu0 %vm60_vm1, %v29_v1 }
   0x8   :  { %12 = vsyncpa [#allocation3], 0  ;;  %150 = vmatprep.mubr.f32.mxu0 %v831_v6  ;;  %39 = vperm.xlu0 %792, %v33_v7   ;;  %v34_v11 = vld [vmem:[%s982_s2 + $0x8] sm:$0xff]  ;;  %v36_v12 = vld [vmem:[%s982_s2 + $0x18] sm:$0xff]  ;;  %vm294_vm2 = vcmask 261120   ;;  %vm834_vm3 = vmmov 0  }
   0x9   :  { %730 = vmatmul.mubr.msk.f32.gmra.mrb[2].mxu1 %vm60_vm1, %v32_v8  ;;  %793 = vset.pattern.permute.xlu1 %v832_v9  ;;  %v270_v13 = vld [vmem:[%s984_s4] sm:$0xff]  ;;  %v271_v14 = vld [vmem:[%s984_s4 + $0x8] sm:$0xff]  ;;  %v272_v15 = vld [vmem:[%s984_s4 + $0x10] sm:$0xff] }
   0xa   :  { %49 = vperm.xlu1 %793, %v35_v10   ;;  %371 = vmatprep.mubr.f32.mxu1 %v831_v6  ;;  %v273_v16 = vld [vmem:[%s984_s4 + $0x18] sm:$0xff]  ;;  %v494_v17 = vld [vmem:[%s986_s6] sm:$0x7]  ;;  %v267_v54 = vld [vmem:[%s983_s3 + $0x8] sm:$0xff] }
   0xb   :  { %685 = vmatmul.mubr.msk.f32.gmra.mrb[2].mxu0 %vm60_vm1, %v30_v4  ;;  %v937_v18 = vld [vmem:[%s983_s3] sm:$0xff]  ;;  %v268_v57 = vld [vmem:[%s983_s3 + $0x10] sm:$0xff]  ;;  %v269_v63 = vld [vmem:[%s983_s3 + $0x18] sm:$0xff]  ;;  %v833_v4 = vmov 0.0|0.0  }
   0xc   :  { %156 = vmatprep.mubr.f32.mxu0 %v831_v6  ;;  %44 = vperm.xlu0 %792, %v34_v11  }
   0xe   :  { %54 = vperm.xlu1 %793, %v36_v12  }
   0xf   :  { %686 = vmatmul.mubr.msk.f32.gmra.mrb[4].mxu0 %vm60_vm1, %v31_v5 }
  0x10   :  { %162 = vmatprep.mubr.f32.mxu0 %v831_v6  ;;  %276 = vperm.xlu0 %792, %v270_v13  }
  0x12   :  { %281 = vperm.xlu1 %793, %v271_v14  }
  0x13   :  { %687 = vmatmul.mubr.msk.f32.gmra.mrb[6].mxu0 %vm60_vm1, %v32_v8 }
  0x14   :  { %286 = vperm.xlu0 %792, %v272_v15   ;;  %740 = vmatprep.mubr.msk.f32.mxu0 %vm294_vm2, %v937_v18 }
  0x16   :  { %291 = vperm.xlu1 %793, %v273_v16  }
  0x18   :  { %497 = vperm.xlu0 %792, %v494_v17  }
  0x87   :  { %v40_v19 = vpop.permute.xlu0 %39 }
  0x89   :  { %v50_v20 = vpop.permute.xlu1 %49 }
  0x8b   :  { %v45_v21 = vpop.permute.xlu0 %44 }
  0x8d   :  { %v55_v30 = vpop.permute.xlu1 %54 }
  0x8f   :  { %v277_v7 = vpop.permute.xlu0 %276 }
  0x91   :  { %v282_v5 = vpop.permute.xlu1 %281 }
  0x93   :  { %v287_v16 = vpop.permute.xlu0 %286 }
  0x95   :  { %v292_v13 = vpop.permute.xlu1 %291 }
  0xd7   :  { %v728_v22 = vpop.f32.mrb[0].mxu1 }
  0xd8   :  { %v241_v23 = vadd.f32 %v728_v22, %v45_v21  ;;  %v235_v24 = vpop.f32.mrb[1].mxu1 }
  0xd9   :  { %v236_v25 = vadd.f32 %v235_v24, %v40_v19 }
  0xda   :  { %v146_v26 = vpop.f32.mrb[0].mxu0  ;;  %v259_v27 = vmax.f32 %v241_v23, 0.0 }
  0xdb   :  { %v148_v28 = vpop.f32.mrb[1].mxu0  ;;  %v256_v29 = vmax.f32 %v236_v25, 0.0  ;;  %v147_v32 = vadd.f32 %v146_v26, %v40_v19  ;;  %v493_v25 = vld [vmem:[%s985_s5] sm:$0x7]  ;;  %s835_s5 = smov [#allocation2]  }
  0xdc   :  { %v731_v31 = vpop.f32.mrb[2].mxu1  ;;  %v149_v36 = vadd.f32 %v148_v28, %v40_v19  ;;  %s674_s11 = sshll.u32 %s835_s5, 4  ;;  %s675_s11 = int_to_ptr.vmem [resolvable:$true] %s674_s11 }
  0xdd   :  { %v251_v33 = vadd.f32 %v731_v31, %v55_v30  ;;  %v245_v34 = vpop.f32.mrb[3].mxu1  ;;  %v765_v35 = vpack.c.bf16 %v259_v27, %v256_v29  ;;  %v254_v44 = vmax.f32 %v147_v32, 0.0  ;;  %s807_s12 = scalar_lea.vmem %s675_s11, 192  ;;  %p812_p1 = scmp.lt.s32.totalorder %s675_s11, %s675_s11 }
  0xde   :  { %v246_v37 = vadd.f32 %v245_v34, %v50_v20  ;;  %v152_v38 = vpop.f32.mrb[2].mxu0  ;;  %v255_v46 = vmax.f32 %v149_v36, 0.0  ;;  %p808_p0 = scmp.ne.s32.totalorder %s675_s11, %s807_s12  ;;  %p813_p2 = scmp.lt.s32.totalorder %s807_s12, %s807_s12 }
  0xdf   :  { %v265_v39 = vmax.f32 %v251_v33, 0.0  ;;  %v153_v40 = vadd.f32 %v152_v38, %v45_v21  ;;  %v154_v41 = vpop.f32.mrb[3].mxu0  ;;  %766 = vmatprep.subr.bf16.mxu0 %v765_v35 }
  0xe0   :  { %v262_v42 = vmax.f32 %v246_v37, 0.0  ;;  %v155_v43 = vadd.f32 %v154_v41, %v45_v21  ;;  %768 = vmatpush3.bf16.msra.mxu0 %v765_v35  ;;  %p814_p3 = por %p813_p2, %p812_p1 }
  0xe1   :  { %v257_v45 = vmax.f32 %v153_v40, 0.0 }
  0xe2   :  { %v769_v47 = vpack.c.bf16 %v265_v39, %v262_v42  ;;  %v258_v48 = vmax.f32 %v155_v43, 0.0  ;;  %v158_v49 = vpop.f32.mrb[4].mxu0  ;;  %p815_p4 = pnand %p814_p3, %p808_p0 }
  0xe3   :  { %v759_v50 = vpack.c.bf16 %v257_v45, %v254_v44  ;;  %v160_v51 = vpop.f32.mrb[5].mxu0  ;;  %v159_v53 = vadd.f32 %v158_v49, %v50_v20 }
  0xe4   :  { %v757_v52 = vpack.c.bf16 %v258_v48, %v255_v46  ;;  %770 = vmatprep.subr.bf16.mxu0 %v769_v47  ;;  %v161_v55 = vadd.f32 %v160_v51, %v50_v20 }
  0xe5   :  { %772 = vmatpush3.bf16.msra.mxu0 %v769_v47  ;;  %v260_v61 = vmax.f32 %v159_v53, 0.0 }
  0xe6   :  { %v164_v56 = vpop.f32.mrb[6].mxu0  ;;  %758 = vmatprep.subr.bf16.mxu1 %v757_v52  ;;  %v261_v0 = vmax.f32 %v161_v55, 0.0  ;;  %v498_v52 = vpop.permute.xlu0 %497 }
  0xe7   :  { %v165_v58 = vadd.f32 %v164_v56, %v55_v30  ;;  %v166_v59 = vpop.f32.mrb[7].mxu0  ;;  %760 = vmatpush1.bf16.msra.mxu1 %v759_v50 }
  0xe8   :  { %v167_v60 = vadd.f32 %v166_v59, %v55_v30  ;;  %741 = vmatmul.mubr.msk.f32.vlgmr.msra.gmra.mrb[8].mxu0 %vm294_vm2, %v267_v54 }
  0xe9   :  { %v263_v62 = vmax.f32 %v165_v58, 0.0  ;;  %743 = vmatprep.mubr.msk.f32.mxu0 %vm294_vm2, %v268_v57 }
  0xea   :  { %v264_v1 = vmax.f32 %v167_v60, 0.0 }
  0xeb   :  { %v763_v2 = vpack.c.bf16 %v263_v62, %v260_v61 }
  0xec   :  { %v761_v3 = vpack.c.bf16 %v264_v1, %v261_v0  ;;  %744 = vmatmul.mubr.msk.f32.gmra.mrb[10].mxu0 %vm294_vm2, %v269_v63 }
  0xed   :  { %567 = vmatprep.mubr.f32.mxu0 %v831_v6 }
  0xee   :  { %762 = vmatprep.subr.bf16.mxu1 %v761_v3 }
  0xef   :  { %764 = vmatpush1.bf16.msra.mxu1 %v763_v2 }
  0xf0   :  { %781 = vmatprep.subr.bf16.mxu1 %v833_v4 }
  0xf2   :  { %693 = vmatmul.mubr.msk.f32.vlgmr.msra.gmra.mrb[4].mxu1 %vm294_vm2, %v937_v18 }
  0xf3   :  { %377 = vmatprep.mubr.f32.mxu1 %v831_v6 }
  0xf6   :  { %694 = vmatmul.mubr.msk.f32.gmra.mrb[6].mxu1 %vm294_vm2, %v267_v54 }
  0xf7   :  { %383 = vmatprep.mubr.f32.mxu1 %v831_v6 }
  0xfa   :  { %695 = vmatmul.mubr.msk.f32.gmra.mrb[8].mxu1 %vm294_vm2, %v268_v57 }
  0xfb   :  { %389 = vmatprep.mubr.f32.mxu1 %v831_v6 }
  0xfe   :  { %696 = vmatmul.mubr.msk.f32.gmra.mrb[10].mxu1 %vm294_vm2, %v269_v63 }
  0xff   :  { %754 = vmatprep.mubr.msk.f32.mxu1 %vm834_vm3, %v831_v6 }
 0x1bb   :  { %v742_v8 = vpop.f32.mrb[8].mxu0 }
 0x1bc   :  { %v468_v9 = vadd.f32 %v742_v8, %v282_v5  ;;  %v462_v10 = vpop.f32.mrb[9].mxu0 }
 0x1bd   :  { %v463_v11 = vadd.f32 %v462_v10, %v277_v7 }
 0x1be   :  { %v486_v12 = vmax.f32 %v468_v9, 0.0 }
 0x1bf   :  { %v483_v14 = vmax.f32 %v463_v11, 0.0  ;;  %v745_v15 = vpop.f32.mrb[10].mxu0 }
 0x1c0   :  { %v478_v17 = vadd.f32 %v745_v15, %v292_v13  ;;  %v472_v18 = vpop.f32.mrb[11].mxu0 }
 0x1c1   :  { %v782_v19 = vpack.c.bf16 %v486_v12, %v483_v14  ;;  %v473_v20 = vadd.f32 %v472_v18, %v287_v16 }
 0x1c2   :  { %v492_v21 = vmax.f32 %v478_v17, 0.0 }
 0x1c3   :  { %v489_v22 = vmax.f32 %v473_v20, 0.0  ;;  %783 = vmatpush3.bf16.msra.mxu1 %v782_v19 }
 0x1c4   :  { %784 = vmatprep.subr.bf16.mxu1 %v833_v4 }
 0x1c5   :  { %v785_v6 = vpack.c.bf16 %v492_v21, %v489_v22  ;;  %v373_v23 = vpop.f32.mrb[4].mxu1 }
 0x1c6   :  { %v375_v24 = vpop.f32.mrb[5].mxu1  ;;  %v374_v26 = vadd.f32 %v373_v23, %v277_v7 }
 0x1c7   :  { %786 = vmatpush3.bf16.msra.mxu1 %v785_v6  ;;  %v376_v27 = vadd.f32 %v375_v24, %v277_v7 }
 0x1c8   :  { %v481_v32 = vmax.f32 %v374_v26, 0.0 }
 0x1c9   :  { %v379_v28 = vpop.f32.mrb[6].mxu1  ;;  %v482_v34 = vmax.f32 %v376_v27, 0.0 }
 0x1ca   :  { %v380_v29 = vadd.f32 %v379_v28, %v282_v5  ;;  %v381_v30 = vpop.f32.mrb[7].mxu1  ;;  %755 = vmatmul.mubr.msk.f32.vlgmr.msra.gmra.mrb[12].mxu1 %vm294_vm2, %v493_v25 }
 0x1cb   :  { %v382_v31 = vadd.f32 %v381_v30, %v282_v5 }
 0x1cc   :  { %v484_v33 = vmax.f32 %v380_v29, 0.0 }
 0x1cd   :  { %v485_v35 = vmax.f32 %v382_v31, 0.0  ;;  %v385_v36 = vpop.f32.mrb[8].mxu1 }
 0x1ce   :  { %v775_v37 = vpack.c.bf16 %v484_v33, %v481_v32  ;;  %v387_v38 = vpop.f32.mrb[9].mxu1  ;;  %v386_v40 = vadd.f32 %v385_v36, %v287_v16 }
 0x1cf   :  { %v773_v39 = vpack.c.bf16 %v485_v35, %v482_v34  ;;  %v388_v41 = vadd.f32 %v387_v38, %v287_v16 }
 0x1d0   :  { %v487_v46 = vmax.f32 %v386_v40, 0.0 }
 0x1d1   :  { %v391_v42 = vpop.f32.mrb[10].mxu1  ;;  %774 = vmatprep.subr.bf16.mxu0 %v773_v39  ;;  %v488_v48 = vmax.f32 %v388_v41, 0.0 }
 0x1d2   :  { %v392_v43 = vadd.f32 %v391_v42, %v292_v13  ;;  %v393_v44 = vpop.f32.mrb[11].mxu1  ;;  %776 = vmatpush1.bf16.msra.mxu0 %v775_v37 }
 0x1d3   :  { %v394_v45 = vadd.f32 %v393_v44, %v292_v13 }
 0x1d4   :  { %v490_v47 = vmax.f32 %v392_v43, 0.0 }
 0x1d5   :  { %v491_v49 = vmax.f32 %v394_v45, 0.0 }
 0x1d6   :  { %v779_v50 = vpack.c.bf16 %v490_v47, %v487_v46 }
 0x1d7   :  { %v777_v51 = vpack.c.bf16 %v491_v49, %v488_v48 }
 0x1d9   :  { %778 = vmatprep.subr.bf16.mxu0 %v777_v51 }
 0x1da   :  { %780 = vmatpush1.bf16.msra.mxu0 %v779_v50 }
 0x1dd   :  { %701 = vmatmul.mubr.msk.f32.vlgmr.msra.gmra.mrb[12].mxu0 %vm294_vm2, %v493_v25 }
 0x29d   :  { %v640_v53 = vpop.f32.mrb[12].mxu1 }
 0x29e   :  { %v641_v54 = vadd.f32 %v640_v53, %v498_v52  ;;  %v756_v55 = vpop.f32.mrb[13].mxu1 }
 0x2a0   :  { %v705_v56 = vmul.f32 -1.442695, %v641_v54 }
 0x2a2   :  { %795 = vpow2.f32 %v705_v56 }
 0x2ac   :  { %v796_v57 = vpop.eup %795 }
 0x2ad   :  { %v655_v58 = vadd.f32 1.0, %v796_v57 }
 0x2af   :  { %797 = vrcp.f32 %v655_v58 }
 0x2b0   :  { %v569_v59 = vpop.f32.mrb[12].mxu0 }
 0x2b1   :  { %v570_v60 = vadd.f32 %v569_v59, %v498_v52  ;;  %v571_v61 = vpop.f32.mrb[13].mxu0 }
 0x2b2   :  { %v572_v62 = vadd.f32 %v571_v61, %v498_v52 }
 0x2b3   :  { %v703_v63 = vmul.f32 -1.442695, %v570_v60 }
 0x2b4   :  { %v704_v0 = vmul.f32 -1.442695, %v572_v62 }
 0x2b5   :  { %799 = vpow2.f32 %v703_v63 }
 0x2b6   :  { %801 = vpow2.f32 %v704_v0 }
 0x2b9   :  { %v798_v1 = vpop.eup %797 }
 0x2ba   :  { %667 = vst [vmem:[#allocation2 + $0x8] sm:$0x7] %v798_v1 }
 0x2bf   :  { %v800_v2 = vpop.eup %799 }
 0x2c0   :  { %v802_v3 = vpop.eup %801  ;;  %v653_v4 = vadd.f32 1.0, %v800_v2 }
 0x2c1   :  { %v654_v5 = vadd.f32 1.0, %v802_v3 }
 0x2c2   :  { %803 = vrcp.f32 %v653_v4 }
 0x2c3   :  { %805 = vrcp.f32 %v654_v5 }
 0x2cc   :  { %v804_v7 = vpop.eup %803 }
 0x2cd   :  { %v806_v8 = vpop.eup %805 }
 0x2ce   :  { %v664_v9 = vcombine.low %v804_v7, %v806_v8 }
 0x2d0   :  { %666 = vst [vmem:[#allocation2] sm:$0x77] %v664_v9 }
 0x2d1   :  { %818 = shalt.err (!%p815_p4)
}
 0x2d2   :  { %s819_s15 = scalar_lea.hbm %s987_s7, 192 }
 0x2d3   :  { %p820_p5 = scmp.ne.s32.totalorder %s987_s7, %s819_s15  ;;  %p823_p6 = scmp.lt.u32.totalorder %s819_s15, %s987_s7 }
 0x2d5   :  { %p825_p7 = pnand %p823_p6, %p820_p5 }
 0x2d7   :  { %828 = shalt.err (!%p825_p7)
}
 0x2d8   :  { %677 = dma.vmem_to_hbm [thread:$0]  %s675_s11, 192, %s987_s7, [#allocation3]  }
 0x2d9   :  { %829 = dma.done.wait [#allocation3], 192  }
 0x2da   :  { %830 = vsyncadd [#allocation3], 4294967104 }
 0x2db   :  { %681 = vsyncpa [#allocation3], 1 }

</bundles_post_ra>
